<compile_context>
chip_gen: v7x
topology: tpu7x:2x2x1
jax: 0.10.0
libtpu: 0.0.40
codegen_flags: <defaults>
</compile_context>

<pallas_src>
import functools

import jax
import jax.numpy as jnp
from jax import lax
from jax.experimental import pallas as pl
from jax.experimental.pallas import tpu as pltpu


def _round_up(v, m):
    return ((v + m - 1) // m) * m


def _cdiv(a, b):
    return -(-a // b)


def _gmm_kernel(n_extra, H, C,
                x_ref, wt_ref, bt_ref, wh_ref, bh_ref, wp_ref, bp_ref,
                out_ref):
    x = x_ref[...]                                            # [TB, F]

    # ---- fused trunk: hidden1..hidden4 in one lane-dense MXU push -----------
    t = jnp.dot(x, wt_ref[...], preferred_element_type=jnp.float32) + bt_ref[...]
    r = jnp.maximum(t, 0.0)                                   # [TB, 4H]

    # ---- hidden stack, lane-dense: wh_ref[i] is block-diagonal --------------
    # (wh[i] on branch-1 lanes, identity + zero bias on branch 2-4 lanes, so
    #  those lanes are exactly preserved — matching the relu-only no-op loops
    #  of the PyTorch reference.)
    for i in range(n_extra):
        r = jnp.maximum(
            jnp.dot(r, wh_ref[i], preferred_element_type=jnp.float32) + bh_ref[i],
            0.0)
    # TODO(synk): dropout1 treated as identity (eval / inference mode), no RNG.

    # ---- branch-2 residual add, in-lane (no 32-lane slices) -----------------
    lane_h = lax.broadcasted_iota(jnp.int32, t.shape, 1)
    g = r + jnp.where((lane_h >= H) & (lane_h < 2 * H), t, 0.0)

    # ---- fused heads: block-diagonal predict1..predict4 in one MXU push -----
    # output lanes already packed as [y | weight-logits | mean | var | 0-pad].
    raw = jnp.dot(g, wp_ref[...], preferred_element_type=jnp.float32) + bp_ref[...]

    lane = lax.broadcasted_iota(jnp.int32, raw.shape, 1)
    is_logit = (lane >= 1) & (lane < 1 + C)
    is_var = (lane >= 1 + 2 * C) & (lane < 1 + 3 * C)

    # softmax over mixture-weight logits, computed in-lane (masked).
    logits = jnp.where(is_logit, raw, -jnp.inf)
    m = jnp.max(logits, axis=1, keepdims=True)
    e = jnp.exp(logits - m)                                   # exactly 0 off-logit
    w = e / jnp.sum(e, axis=1, keepdims=True)                 # exact divide (tolerance)

    # Constrained last-component mean: sum over the FIRST C-1 components only
    # (no subtract-the-last-term cancellation).  Align w_k with mu_k lanes via
    # a lane rotate (XLU slot, free-ish) instead of narrow slices.
    w_aligned = pltpu.roll(w, shift=C, axis=1)                # w_k under mu_k lane
    first_means = (lane >= 1 + C) & (lane < 2 * C)            # lanes of mu_0..mu_{C-2}
    s = jnp.sum(jnp.where(first_means, w_aligned * raw, 0.0), axis=1, keepdims=True)
    w_last = jnp.sum(jnp.where(lane == C, w, 0.0), axis=1, keepdims=True)
    mean_last = -s / w_last

    # Scatter results back in-lane; pad lanes of raw are already zero.
    out = jnp.where(is_logit, w, raw)
    out = jnp.where(is_var, jnp.abs(raw), out)
    out = jnp.where(lane == 2 * C, mean_last, out)
    out_ref[...] = out                                        # one unmasked store


@functools.partial(jax.jit, static_argnames="num_hidden_layers")
def gaussian_mixture_forward(x, params, num_hidden_layers):
    B, F = x.shape
    H = params["w1"].shape[1]
    C = params["wp2"].shape[1]
    H4 = 4 * H
    n_extra = num_hidden_layers - 1

    # ---- host-side weight packing --------------------------------------------
    w_trunk = jnp.concatenate(
        [params["w1"], params["w2"], params["w3"], params["w4"]], axis=1)  # [F, 4H]
    b_trunk = jnp.concatenate(
        [params["b1"], params["b2"], params["b3"], params["b4"]], axis=1)  # [1, 4H]

    out_w = 1 + 3 * C
    P = _round_up(out_w, 128)                 # lane-dense packed output width

    wp_bd = jnp.zeros((H4, P), jnp.float32)
    wp_bd = wp_bd.at[0 * H:1 * H, 0:1].set(params["wp1"])
    wp_bd = wp_bd.at[1 * H:2 * H, 1:1 + C].set(params["wp2"])
    wp_bd = wp_bd.at[2 * H:3 * H, 1 + C:1 + 2 * C].set(params["wp3"])
    wp_bd = wp_bd.at[3 * H:4 * H, 1 + 2 * C:1 + 3 * C].set(params["wp4"])

    bp = jnp.zeros((1, P), jnp.float32)
    bp = bp.at[:, 0:1].set(params["bp1"])
    bp = bp.at[:, 1:1 + C].set(params["bp2"])
    bp = bp.at[:, 1 + C:1 + 2 * C].set(params["bp3"])
    bp = bp.at[:, 1 + 2 * C:1 + 3 * C].set(params["bp4"])

    # Hidden-stack weights, block-diagonal so the in-kernel loop stays 128-lane
    # dense (identity blocks make branches 2-4 an exact no-op, as in the spec).
    if n_extra > 0:
        def blockdiag(w_i):
            m = jnp.zeros((H4, H4), jnp.float32)
            m = m.at[0:H, 0:H].set(w_i)
            idx = jnp.arange(H, H4)
            return m.at[idx, idx].set(1.0)
        wh_bd = jax.vmap(blockdiag)(params["wh"])                       # [n,4H,4H]
        bh_bd = jnp.pad(params["bh"], ((0, 0), (0, 0), (0, 3 * H)))     # [n,1,4H]
        n_wh = n_extra
    else:  # dummy (never read in the kernel)
        wh_bd = jnp.zeros((1, H4, H4), jnp.float32)
        bh_bd = jnp.zeros((1, 1, H4), jnp.float32)
        n_wh = 1

    # ---- batch tiling: balanced tiles, TB a multiple of 8, capped at ~512 ----
    B8 = _round_up(B, 8)
    if B8 <= 512:
        TB = B8
    else:
        n_tiles = _cdiv(B8, 512)
        TB = _round_up(_cdiv(B8, n_tiles), 8)
    B_pad = _round_up(B8, TB)
    xin = x if B_pad == B else jnp.pad(x, ((0, B_pad - B), (0, 0)))

    grid = (B_pad // TB,)
    kernel = functools.partial(_gmm_kernel, n_extra, H, C)
    const2 = lambda i: (0, 0)
    const3 = lambda i: (0, 0, 0)

    packed = pl.pallas_call(
        kernel,
        out_shape=jax.ShapeDtypeStruct((B_pad, P), jnp.float32),
        grid=grid,
        in_specs=[
            pl.BlockSpec((TB, F), lambda i: (i, 0)),          # x, tiled on batch
            pl.BlockSpec((F, H4), const2),                    # fused trunk W
            pl.BlockSpec((1, H4), const2),                    # fused trunk b
            pl.BlockSpec((n_wh, H4, H4), const3),             # block-diag hidden W
            pl.BlockSpec((n_wh, 1, H4), const3),              # padded hidden b
            pl.BlockSpec((H4, P), const2),                    # block-diag heads W
            pl.BlockSpec((1, P), const2),                     # packed heads b
        ],
        out_specs=pl.BlockSpec((TB, P), lambda i: (i, 0)),
        compiler_params=pltpu.CompilerParams(
            dimension_semantics=("parallel",)),
    )(xin, w_trunk, b_trunk, wh_bd, bh_bd, wp_bd, bp)

    out_y = packed[:B, 0:1]
    out_weight = packed[:B, 1:1 + C]
    output_mean = packed[:B, 1 + C:1 + 2 * C]
    output_variance = packed[:B, 1 + 2 * C:1 + 3 * C]
    return out_y, out_weight, output_mean, output_variance


def make_params(key, n_feature, n_hidden, n_component, num_hidden_layers):
    """Deterministic synthetic parameters (same shapes as the PyTorch module)."""
    ks = jax.random.split(key, 20)
    s = 0.1

    def lin(k, fan_in, fan_out):
        kw, kb = jax.random.split(k)
        w = jax.random.normal(kw, (fan_in, fan_out), jnp.float32) * s
        b = jax.random.normal(kb, (1, fan_out), jnp.float32) * s
        return w, b

    p = {}
    p["w1"], p["b1"] = lin(ks[0], n_feature, n_hidden)
    p["w2"], p["b2"] = lin(ks[1], n_feature, n_hidden)
    p["w3"], p["b3"] = lin(ks[2], n_feature, n_hidden)
    p["w4"], p["b4"] = lin(ks[3], n_feature, n_hidden)
    n_extra = max(num_hidden_layers - 1, 1)
    p["wh"] = jax.random.normal(ks[4], (n_extra, n_hidden, n_hidden), jnp.float32) * s
    p["bh"] = jax.random.normal(ks[5], (n_extra, 1, n_hidden), jnp.float32) * s
    p["wp1"], p["bp1"] = lin(ks[6], n_hidden, 1)
    p["wp2"], p["bp2"] = lin(ks[7], n_hidden, n_component)
    p["wp3"], p["bp3"] = lin(ks[8], n_hidden, n_component)
    p["wp4"], p["bp4"] = lin(ks[9], n_hidden, n_component)
    return p


def reference_forward(x, p, num_hidden_layers):
    """Pure-JAX mirror of the PyTorch forward (eval mode), for verification."""
    n_extra = num_hidden_layers - 1
    relu = lambda v: jnp.maximum(v, 0.0)

    out_y = relu(x @ p["w1"] + p["b1"])
    for i in range(n_extra):
        out_y = relu(out_y @ p["wh"][i] + p["bh"][i])
    out_y = out_y @ p["wp1"] + p["bp1"]

    out_w = x @ p["w2"] + p["b2"]
    residue = out_w
    out_w = relu(out_w)
    for _ in range(n_extra):
        out_w = relu(out_w)
    out_w = out_w + residue
    out_w = jax.nn.softmax(out_w @ p["wp2"] + p["bp2"], axis=1)

    out_m = relu(x @ p["w3"] + p["b3"])
    for _ in range(n_extra):
        out_m = relu(out_m)
    out_m = out_m @ p["wp3"] + p["bp3"]
    mean_last = -jnp.sum(out_w[:, :-1] * out_m[:, :-1], axis=1) / out_w[:, -1]
    out_mean = jnp.concatenate([out_m[:, :-1], mean_last[:, None]], axis=1)

    out_v = relu(x @ p["w4"] + p["b4"])
    for _ in range(n_extra):
        out_v = relu(out_v)
    out_v = jnp.abs(out_v @ p["wp4"] + p["bp4"])
    return out_y, out_w, out_mean, out_v


if __name__ == "__main__":
    n_feature, n_hidden, n_component, num_hidden_layers = 16, 32, 4, 3

    key = jax.random.PRNGKey(0)
    kx, kp, kx2 = jax.random.split(key, 3)
    params = make_params(kp, n_feature, n_hidden, n_component, num_hidden_layers)

    # Primary small test (B multiple of 8) + a ragged batch to exercise the
    # wrapper-side padding / partial-tile path.
    for B, kk in ((8, kx), (70, kx2)):
        x = jax.random.normal(kk, (B, n_feature), jnp.float32)
        outs = gaussian_mixture_forward(x, params, num_hidden_layers)
        outs = jax.block_until_ready(outs)
        refs = reference_forward(x, params, num_hidden_layers)
        for o, r in zip(outs, refs):
            assert o.shape == r.shape and o.dtype == r.dtype
            assert jnp.max(jnp.abs(o - r)) < 1e-4, "mismatch vs. JAX reference"

    print("KERNEL_OK")
</pallas_src>

<mosaic_0001>
module attributes {stable_mosaic.version = 11 : i64} {
  func.func @_gmm_kernel(%arg0: i32, %arg1: memref<8x16xf32, #tpu.memory_space<vmem>>, %arg2: memref<16x128xf32, #tpu.memory_space<vmem>>, %arg3: memref<1x128xf32, #tpu.memory_space<vmem>>, %arg4: memref<2x128x128xf32, #tpu.memory_space<vmem>>, %arg5: memref<2x1x128xf32, #tpu.memory_space<vmem>>, %arg6: memref<128x128xf32, #tpu.memory_space<vmem>>, %arg7: memref<1x128xf32, #tpu.memory_space<vmem>>, %arg8: memref<8x128xf32, #tpu.memory_space<vmem>>) attributes {dimension_semantics = [#tpu.dimension_semantics<parallel>], iteration_bounds = array<i64: 1>, scalar_prefetch = 0 : i64, scratch_operands = 0 : i64, tpu.core_type = #tpu.core_type<tc>, window_params = [{transform_indices = @transform_0, window_bounds = array<i64: 8, 16>}, {pipeline_mode = #tpu.pipeline_mode<synchronous>, transform_indices = @transform_1, window_bounds = array<i64: 16, 128>}, {pipeline_mode = #tpu.pipeline_mode<synchronous>, transform_indices = @transform_2, window_bounds = array<i64: 1, 128>}, {pipeline_mode = #tpu.pipeline_mode<synchronous>, transform_indices = @transform_3, window_bounds = array<i64: 2, 128, 128>}, {pipeline_mode = #tpu.pipeline_mode<synchronous>, transform_indices = @transform_4, window_bounds = array<i64: 2, 1, 128>}, {pipeline_mode = #tpu.pipeline_mode<synchronous>, transform_indices = @transform_5, window_bounds = array<i64: 128, 128>}, {pipeline_mode = #tpu.pipeline_mode<synchronous>, transform_indices = @transform_6, window_bounds = array<i64: 1, 128>}, {transform_indices = @transform_7, window_bounds = array<i64: 8, 128>}]} {
    %c0 = arith.constant 0 : index
    %c0_0 = arith.constant 0 : index
    %0 = vector.load %arg1[%c0, %c0_0] : memref<8x16xf32, #tpu.memory_space<vmem>>, vector<8x16xf32>
    %c0_1 = arith.constant 0 : index
    %c0_2 = arith.constant 0 : index
    %1 = vector.load %arg2[%c0_1, %c0_2] : memref<16x128xf32, #tpu.memory_space<vmem>>, vector<16x128xf32>
    %cst = arith.constant dense<0.000000e+00> : vector<8x128xf32>
    %2 = tpu.matmul %0, %1, %cst {dimension_numbers = #tpu.dot_dimension_numbers<[1], [0], [0], [1], [0, 0, 1, 1], [], []>} : vector<8x16xf32>, vector<16x128xf32>, vector<8x128xf32> -> vector<8x128xf32>
    %c0_3 = arith.constant 0 : index
    %c0_4 = arith.constant 0 : index
    %3 = vector.load %arg3[%c0_3, %c0_4] : memref<1x128xf32, #tpu.memory_space<vmem>>, vector<1x128xf32>
    %4 = vector.broadcast %3 : vector<1x128xf32> to vector<8x128xf32>
    %5 = arith.addf %2, %4 : vector<8x128xf32>
    %cst_5 = arith.constant 0.000000e+00 : f32
    %6 = vector.broadcast %cst_5 : f32 to vector<8x128xf32>
    %7 = arith.maximumf %5, %6 : vector<8x128xf32>
    %c0_6 = arith.constant 0 : index
    %c0_7 = arith.constant 0 : index
    %c0_8 = arith.constant 0 : index
    %8 = vector.load %arg4[%c0_6, %c0_7, %c0_8] : memref<2x128x128xf32, #tpu.memory_space<vmem>>, vector<1x128x128xf32>
    %9 = vector.shape_cast %8 : vector<1x128x128xf32> to vector<128x128xf32>
    %cst_9 = arith.constant dense<0.000000e+00> : vector<8x128xf32>
    %10 = tpu.matmul %7, %9, %cst_9 {dimension_numbers = #tpu.dot_dimension_numbers<[1], [0], [0], [1], [0, 0, 1, 1], [], []>} : vector<8x128xf32>, vector<128x128xf32>, vector<8x128xf32> -> vector<8x128xf32>
    %c0_10 = arith.constant 0 : index
    %c0_11 = arith.constant 0 : index
    %c0_12 = arith.constant 0 : index
    %11 = vector.load %arg5[%c0_10, %c0_11, %c0_12] : memref<2x1x128xf32, #tpu.memory_space<vmem>>, vector<1x1x128xf32>
    %12 = vector.shape_cast %11 : vector<1x1x128xf32> to vector<1x128xf32>
    %13 = vector.broadcast %12 : vector<1x128xf32> to vector<8x128xf32>
    %14 = arith.addf %10, %13 : vector<8x128xf32>
    %cst_13 = arith.constant 0.000000e+00 : f32
    %15 = vector.broadcast %cst_13 : f32 to vector<8x128xf32>
    %16 = arith.maximumf %14, %15 : vector<8x128xf32>
    %c1 = arith.constant 1 : index
    %c0_14 = arith.constant 0 : index
    %c0_15 = arith.constant 0 : index
    %17 = vector.load %arg4[%c1, %c0_14, %c0_15] : memref<2x128x128xf32, #tpu.memory_space<vmem>>, vector<1x128x128xf32>
    %18 = vector.shape_cast %17 : vector<1x128x128xf32> to vector<128x128xf32>
    %cst_16 = arith.constant dense<0.000000e+00> : vector<8x128xf32>
    %19 = tpu.matmul %16, %18, %cst_16 {dimension_numbers = #tpu.dot_dimension_numbers<[1], [0], [0], [1], [0, 0, 1, 1], [], []>} : vector<8x128xf32>, vector<128x128xf32>, vector<8x128xf32> -> vector<8x128xf32>
    %c1_17 = arith.constant 1 : index
    %c0_18 = arith.constant 0 : index
    %c0_19 = arith.constant 0 : index
    %20 = vector.load %arg5[%c1_17, %c0_18, %c0_19] : memref<2x1x128xf32, #tpu.memory_space<vmem>>, vector<1x1x128xf32>
    %21 = vector.shape_cast %20 : vector<1x1x128xf32> to vector<1x128xf32>
    %22 = vector.broadcast %21 : vector<1x128xf32> to vector<8x128xf32>
    %23 = arith.addf %19, %22 : vector<8x128xf32>
    %cst_20 = arith.constant 0.000000e+00 : f32
    %24 = vector.broadcast %cst_20 : f32 to vector<8x128xf32>
    %25 = arith.maximumf %23, %24 : vector<8x128xf32>
    %26 = tpu.iota {dimensions = array<i32: 1>} : vector<8x128xi32>
    %c32_i32 = arith.constant 32 : i32
    %27 = vector.broadcast %c32_i32 : i32 to vector<8x128xi32>
    %28 = arith.cmpi sge, %26, %27 : vector<8x128xi32>
    %c64_i32 = arith.constant 64 : i32
    %29 = vector.broadcast %c64_i32 : i32 to vector<8x128xi32>
    %30 = arith.cmpi slt, %26, %29 : vector<8x128xi32>
    %31 = arith.andi %28, %30 : vector<8x128xi1>
    %cst_21 = arith.constant 0.000000e+00 : f32
    %32 = vector.broadcast %cst_21 : f32 to vector<8x128xf32>
    %33 = arith.select %31, %5, %32 : vector<8x128xi1>, vector<8x128xf32>
    %34 = arith.addf %25, %33 : vector<8x128xf32>
    %c0_22 = arith.constant 0 : index
    %c0_23 = arith.constant 0 : index
    %35 = vector.load %arg6[%c0_22, %c0_23] : memref<128x128xf32, #tpu.memory_space<vmem>>, vector<128x128xf32>
    %cst_24 = arith.constant dense<0.000000e+00> : vector<8x128xf32>
    %36 = tpu.matmul %34, %35, %cst_24 {dimension_numbers = #tpu.dot_dimension_numbers<[1], [0], [0], [1], [0, 0, 1, 1], [], []>} : vector<8x128xf32>, vector<128x128xf32>, vector<8x128xf32> -> vector<8x128xf32>
    %c0_25 = arith.constant 0 : index
    %c0_26 = arith.constant 0 : index
    %37 = vector.load %arg7[%c0_25, %c0_26] : memref<1x128xf32, #tpu.memory_space<vmem>>, vector<1x128xf32>
    %38 = vector.broadcast %37 : vector<1x128xf32> to vector<8x128xf32>
    %39 = arith.addf %36, %38 : vector<8x128xf32>
    %40 = tpu.iota {dimensions = array<i32: 1>} : vector<8x128xi32>
    %c1_i32 = arith.constant 1 : i32
    %41 = vector.broadcast %c1_i32 : i32 to vector<8x128xi32>
    %42 = arith.cmpi sge, %40, %41 : vector<8x128xi32>
    %c5_i32 = arith.constant 5 : i32
    %43 = vector.broadcast %c5_i32 : i32 to vector<8x128xi32>
    %44 = arith.cmpi slt, %40, %43 : vector<8x128xi32>
    %45 = arith.andi %42, %44 : vector<8x128xi1>
    %c9_i32 = arith.constant 9 : i32
    %46 = vector.broadcast %c9_i32 : i32 to vector<8x128xi32>
    %47 = arith.cmpi sge, %40, %46 : vector<8x128xi32>
    %c13_i32 = arith.constant 13 : i32
    %48 = vector.broadcast %c13_i32 : i32 to vector<8x128xi32>
    %49 = arith.cmpi slt, %40, %48 : vector<8x128xi32>
    %50 = arith.andi %47, %49 : vector<8x128xi1>
    %cst_27 = arith.constant 0xFF800000 : f32
    %51 = vector.broadcast %cst_27 : f32 to vector<8x128xf32>
    %52 = arith.select %45, %39, %51 : vector<8x128xi1>, vector<8x128xf32>
    %cst_28 = arith.constant dense<0xFF800000> : vector<8xf32>
    %53 = vector.multi_reduction <maximumf>, %52, %cst_28 [1] : vector<8x128xf32> to vector<8xf32>
    %54 = vector.shape_cast %53 : vector<8xf32> to vector<8x1xf32>
    %55 = vector.broadcast %54 : vector<8x1xf32> to vector<8x128xf32>
    %56 = arith.subf %52, %55 : vector<8x128xf32>
    %57 = math.exp %56 : vector<8x128xf32>
    %cst_29 = arith.constant dense<0.000000e+00> : vector<8xf32>
    %58 = vector.multi_reduction <add>, %57, %cst_29 [1] : vector<8x128xf32> to vector<8xf32>
    %59 = vector.shape_cast %58 : vector<8xf32> to vector<8x1xf32>
    %60 = vector.broadcast %59 : vector<8x1xf32> to vector<8x128xf32>
    %61 = arith.divf %57, %60 : vector<8x128xf32>
    %c4_i32 = arith.constant 4 : i32
    %62 = tpu.dynamic_rotate %61 by %c4_i32 dim 1 : vector<8x128xf32>, i32 -> vector<8x128xf32>
    %c5_i32_30 = arith.constant 5 : i32
    %63 = vector.broadcast %c5_i32_30 : i32 to vector<8x128xi32>
    %64 = arith.cmpi sge, %40, %63 : vector<8x128xi32>
    %c8_i32 = arith.constant 8 : i32
    %65 = vector.broadcast %c8_i32 : i32 to vector<8x128xi32>
    %66 = arith.cmpi slt, %40, %65 : vector<8x128xi32>
    %67 = arith.andi %64, %66 : vector<8x128xi1>
    %68 = arith.mulf %62, %39 : vector<8x128xf32>
    %cst_31 = arith.constant 0.000000e+00 : f32
    %69 = vector.broadcast %cst_31 : f32 to vector<8x128xf32>
    %70 = arith.select %67, %68, %69 : vector<8x128xi1>, vector<8x128xf32>
    %cst_32 = arith.constant dense<0.000000e+00> : vector<8xf32>
    %71 = vector.multi_reduction <add>, %70, %cst_32 [1] : vector<8x128xf32> to vector<8xf32>
    %72 = vector.shape_cast %71 : vector<8xf32> to vector<8x1xf32>
    %c4_i32_33 = arith.constant 4 : i32
    %73 = vector.broadcast %c4_i32_33 : i32 to vector<8x128xi32>
    %74 = arith.cmpi eq, %40, %73 : vector<8x128xi32>
    %cst_34 = arith.constant 0.000000e+00 : f32
    %75 = vector.broadcast %cst_34 : f32 to vector<8x128xf32>
    %76 = arith.select %74, %61, %75 : vector<8x128xi1>, vector<8x128xf32>
    %cst_35 = arith.constant dense<0.000000e+00> : vector<8xf32>
    %77 = vector.multi_reduction <add>, %76, %cst_35 [1] : vector<8x128xf32> to vector<8xf32>
    %78 = vector.shape_cast %77 : vector<8xf32> to vector<8x1xf32>
    %cst_36 = arith.constant 0.000000e+00 : f32
    %79 = vector.broadcast %cst_36 : f32 to vector<8x1xf32>
    %80 = arith.subf %79, %72 : vector<8x1xf32>
    %81 = arith.divf %80, %78 : vector<8x1xf32>
    %82 = arith.select %45, %61, %39 : vector<8x128xi1>, vector<8x128xf32>
    %83 = math.absf %39 : vector<8x128xf32>
    %84 = arith.select %50, %83, %82 : vector<8x128xi1>, vector<8x128xf32>
    %c8_i32_37 = arith.constant 8 : i32
    %85 = vector.broadcast %c8_i32_37 : i32 to vector<8x128xi32>
    %86 = arith.cmpi eq, %40, %85 : vector<8x128xi32>
    %87 = vector.shape_cast %81 : vector<8x1xf32> to vector<8x1xf32>
    %88 = vector.broadcast %87 : vector<8x1xf32> to vector<8x128xf32>
    %89 = arith.select %86, %88, %84 : vector<8x128xi1>, vector<8x128xf32>
    %c0_38 = arith.constant 0 : index
    %c0_39 = arith.constant 0 : index
    %90 = vector.load %arg8[%c0_38, %c0_39] : memref<8x128xf32, #tpu.memory_space<vmem>>, vector<8x128xf32>
    tpu.vector_store %arg8[%c0_38, %c0_39], %89 {strides = array<i32>} : memref<8x128xf32, #tpu.memory_space<vmem>>, vector<8x128xf32>,
    return
  }
  func.func @transform_0(%arg0: i32) -> (i32, i32) {
    %c0_i32 = arith.constant 0 : i32
    %c0_i32_0 = arith.constant 0 : i32
    return %arg0, %c0_i32 : i32, i32
  }
  func.func @transform_1(%arg0: i32) -> (i32, i32) {
    %c0_i32 = arith.constant 0 : i32
    %c0_i32_0 = arith.constant 0 : i32
    %c0_i32_1 = arith.constant 0 : i32
    return %c0_i32, %c0_i32_0 : i32, i32
  }
  func.func @transform_2(%arg0: i32) -> (i32, i32) {
    %c0_i32 = arith.constant 0 : i32
    %c0_i32_0 = arith.constant 0 : i32
    %c0_i32_1 = arith.constant 0 : i32
    return %c0_i32, %c0_i32_0 : i32, i32
  }
  func.func @transform_3(%arg0: i32) -> (i32, i32, i32) {
    %c0_i32 = arith.constant 0 : i32
    %c0_i32_0 = arith.constant 0 : i32
    %c0_i32_1 = arith.constant 0 : i32
    %c0_i32_2 = arith.constant 0 : i32
    return %c0_i32, %c0_i32_0, %c0_i32_1 : i32, i32, i32
  }
  func.func @transform_4(%arg0: i32) -> (i32, i32, i32) {
    %c0_i32 = arith.constant 0 : i32
    %c0_i32_0 = arith.constant 0 : i32
    %c0_i32_1 = arith.constant 0 : i32
    %c0_i32_2 = arith.constant 0 : i32
    return %c0_i32, %c0_i32_0, %c0_i32_1 : i32, i32, i32
  }
  func.func @transform_5(%arg0: i32) -> (i32, i32) {
    %c0_i32 = arith.constant 0 : i32
    %c0_i32_0 = arith.constant 0 : i32
    %c0_i32_1 = arith.constant 0 : i32
    return %c0_i32, %c0_i32_0 : i32, i32
  }
  func.func @transform_6(%arg0: i32) -> (i32, i32) {
    %c0_i32 = arith.constant 0 : i32
    %c0_i32_0 = arith.constant 0 : i32
    %c0_i32_1 = arith.constant 0 : i32
    return %c0_i32, %c0_i32_0 : i32, i32
  }
  func.func @transform_7(%arg0: i32) -> (i32, i32) {
    %c0_i32 = arith.constant 0 : i32
    %c0_i32_0 = arith.constant 0 : i32
    return %arg0, %c0_i32 : i32, i32
  }
}

</mosaic_0001>

<bundles_post_ra>
// kernel: gaussian_mixture_forward.1
= control target key start
LH: loop header
LB: loop body
LE: loop exit
PB: predicated region body
PF: predicated region fallthrough
CT: control target
= control target key end

     0   :  { %v716_v0 = vmov 0.0|0.0   ;;  %vm717_vm0 = vmmov 0   ;;  %v718_v3 = vmov 0.0   ;;  %vm36_vm1 = vcmask 130048   ;;  %s973_s1 = inlined_call_operand.vmem [shape: f32[16,128], index: 1, kind: input, shape index: {}]   ;;  %s974_s3 = inlined_call_operand.vmem [shape: f32[2,128,128], index: 3, kind: input, shape index: {}]   ;;  %s975_s0 = inlined_call_operand.vmem [shape: f32[8,16], index: 0, kind: input, shape index: {}]   ;;  %s976_s2 = inlined_call_operand.vmem [shape: f32[1,128], index: 2, kind: input, shape index: {}]   ;;  %s977_s5 = inlined_call_operand.vmem [shape: f32[128,128], index: 5, kind: input, shape index: {}]   ;;  %s978_s4 = inlined_call_operand.vmem [shape: f32[2,1,128], index: 4, kind: input, shape index: {}]   ;;  %s979_s6 = inlined_call_operand.vmem [shape: f32[1,128], index: 6, kind: input, shape index: {}]   ;;  %s980_s7 = inlined_call_operand.vmem [shape: f32[8,128], index: 7, kind: output, shape index: {}]  }
   0x1   :  { %631 = vmatprep.subr.bf16.mxu0 %v716_v0  ;;  %v27_v1 = vld [vmem:[%s973_s1] sm:$0xff]  ;;  %v28_v2 = vld [vmem:[%s973_s1 + $0x8] sm:$0xff]  ;;  %523 = vmatprep.mubr.msk.f32.mxu0 %vm717_vm0, %v718_v3  ;;  %v113_v7 = vld [vmem:[%s974_s3 + $0x10] sm:$0xff] }
   0x2   :  { %v632_v4 = vpack.c.bf16 %v28_v2, %v27_v1  ;;  %634 = vmatprep.subr.bf16.mxu1 %v716_v0  ;;  %v111_v5 = vld [vmem:[%s974_s3] sm:$0xff]  ;;  %v112_v6 = vld [vmem:[%s974_s3 + $0x8] sm:$0xff]  ;;  %558 = vmatprep.mubr.msk.f32.mxu1 %vm717_vm0, %v718_v3  ;;  %v114_v9 = vld [vmem:[%s974_s3 + $0x18] sm:$0xff] }
   0x3   :  { %v635_v8 = vpack.c.bf16 %v112_v6, %v111_v5  ;;  %v26_v10 = vld [vmem:[%s975_s0] sm:$0xff]  ;;  %v638_v11 = vpack.c.bf16 %v114_v9, %v113_v7  ;;  %v116_v13 = vld [vmem:[%s974_s3 + $0x28] sm:$0xff]  ;;  %v117_v15 = vld [vmem:[%s974_s3 + $0x30] sm:$0xff] }
   0x4   :  { %633 = vmatpush3.bf16.msra.mxu0 %v632_v4  ;;  %v115_v12 = vld [vmem:[%s974_s3 + $0x20] sm:$0xff]  ;;  %v118_v16 = vld [vmem:[%s974_s3 + $0x38] sm:$0xff]  ;;  %v120_v19 = vld [vmem:[%s974_s3 + $0x48] sm:$0xff] }
   0x5   :  { %636 = vmatpush3.bf16.msra.mxu1 %v635_v8  ;;  %658 = vmatprep.subr.bf16.mxu0 %v716_v0  ;;  %v641_v14 = vpack.c.bf16 %v116_v13, %v115_v12  ;;  %v644_v17 = vpack.c.bf16 %v118_v16, %v117_v15  ;;  %v119_v18 = vld [vmem:[%s974_s3 + $0x40] sm:$0xff]  ;;  %v121_v21 = vld [vmem:[%s974_s3 + $0x50] sm:$0xff]  ;;  %v122_v22 = vld [vmem:[%s974_s3 + $0x58] sm:$0xff] }
   0x6   :  { %637 = vmatprep.subr.bf16.mxu1 %v716_v0  ;;  %v647_v20 = vpack.c.bf16 %v120_v19, %v119_v18  ;;  %v650_v23 = vpack.c.bf16 %v122_v22, %v121_v21  ;;  %v123_v24 = vld [vmem:[%s974_s3 + $0x60] sm:$0xff]  ;;  %v124_v25 = vld [vmem:[%s974_s3 + $0x68] sm:$0xff]  ;;  %v125_v27 = vld [vmem:[%s974_s3 + $0x70] sm:$0xff] }
   0x7   :  { %524 = vmatmul.mubr.msk.f32.vlgmr.msra.gmra.mrb[0].mxu0 %vm36_vm1, %v26_v10  ;;  %v653_v26 = vpack.c.bf16 %v124_v25, %v123_v24  ;;  %v126_v28 = vld [vmem:[%s974_s3 + $0x78] sm:$0xff]  ;;  %v446_v30 = vld [vmem:[%s974_s3 + $0x80] sm:$0xff]  ;;  %v447_v31 = vld [vmem:[%s974_s3 + $0x88] sm:$0xff]  ;;  %v301_v25 = vlaneseq }
   0x8   :  { %593 = vmatprep.mubr.msk.f32.mxu0 %vm717_vm0, %v718_v3  ;;  %v656_v29 = vpack.c.bf16 %v126_v28, %v125_v27  ;;  %v448_v32 = vld [vmem:[%s974_s3 + $0x90] sm:$0xff]  ;;  %v659_v33 = vpack.c.bf16 %v447_v31, %v446_v30  ;;  %v449_v34 = vld [vmem:[%s974_s3 + $0x98] sm:$0xff]  ;;  %v450_v36 = vld [vmem:[%s974_s3 + $0xa0] sm:$0xff] }
   0x9   :  { %639 = vmatpush3.bf16.msra.mxu1 %v638_v11  ;;  %v662_v35 = vpack.c.bf16 %v449_v34, %v448_v32  ;;  %v451_v37 = vld [vmem:[%s974_s3 + $0xa8] sm:$0xff]  ;;  %v452_v39 = vld [vmem:[%s974_s3 + $0xb0] sm:$0xff]  ;;  %v453_v40 = vld [vmem:[%s974_s3 + $0xb8] sm:$0xff] }
   0xa   :  { %640 = vmatprep.subr.bf16.mxu1 %v716_v0  ;;  %660 = vmatpush3.bf16.msra.mxu0 %v659_v33  ;;  %v665_v38 = vpack.c.bf16 %v451_v37, %v450_v36  ;;  %v668_v41 = vpack.c.bf16 %v453_v40, %v452_v39  ;;  %v454_v42 = vld [vmem:[%s974_s3 + $0xc0] sm:$0xff]  ;;  %v455_v43 = vld [vmem:[%s974_s3 + $0xc8] sm:$0xff]  ;;  %v456_v45 = vld [vmem:[%s974_s3 + $0xd0] sm:$0xff] }
   0xb   :  { %661 = vmatprep.subr.bf16.mxu0 %v716_v0  ;;  %v671_v44 = vpack.c.bf16 %v455_v43, %v454_v42  ;;  %v457_v46 = vld [vmem:[%s974_s3 + $0xd8] sm:$0xff]  ;;  %v458_v48 = vld [vmem:[%s974_s3 + $0xe0] sm:$0xff]  ;;  %v459_v49 = vld [vmem:[%s974_s3 + $0xe8] sm:$0xff] }
   0xc   :  { %v674_v47 = vpack.c.bf16 %v457_v46, %v456_v45  ;;  %v677_v50 = vpack.c.bf16 %v459_v49, %v458_v48  ;;  %v443_v51 = vld [vmem:[%s976_s2] ss:$0 sm:$0xff]  ;;  %v460_v56 = vld [vmem:[%s974_s3 + $0xf0] sm:$0xff]  ;;  %v461_v57 = vld [vmem:[%s974_s3 + $0xf8] sm:$0xff] }
   0xd   :  { %642 = vmatpush3.bf16.msra.mxu1 %v641_v14  ;;  %v680_v58 = vpack.c.bf16 %v461_v57, %v460_v56  ;;  %v308_v59 = vld [vmem:[%s977_s5] sm:$0xff]  ;;  %v309_v60 = vld [vmem:[%s977_s5 + $0x8] sm:$0xff]  ;;  %v310_v61 = vld [vmem:[%s977_s5 + $0x10] sm:$0xff] }
   0xe   :  { %643 = vmatprep.subr.bf16.mxu1 %v716_v0  ;;  %663 = vmatpush3.bf16.msra.mxu0 %v662_v35  ;;  %v683_v62 = vpack.c.bf16 %v309_v60, %v308_v59  ;;  %v311_v63 = vld [vmem:[%s977_s5 + $0x18] sm:$0xff]  ;;  %v312_v2 = vld [vmem:[%s977_s5 + $0x20] sm:$0xff]  ;;  %v314_v5 = vld [vmem:[%s977_s5 + $0x30] sm:$0xff] }
   0xf   :  { %664 = vmatprep.subr.bf16.mxu0 %v716_v0  ;;  %v686_v1 = vpack.c.bf16 %v311_v63, %v310_v61  ;;  %v315_v6 = vld [vmem:[%s977_s5 + $0x38] sm:$0xff]  ;;  %v316_v8 = vld [vmem:[%s977_s5 + $0x40] sm:$0xff]  ;;  %v317_v9 = vld [vmem:[%s977_s5 + $0x48] sm:$0xff] }
  0x10   :  { %v692_v7 = vpack.c.bf16 %v315_v6, %v314_v5  ;;  %v695_v10 = vpack.c.bf16 %v317_v9, %v316_v8  ;;  %v318_v11 = vld [vmem:[%s977_s5 + $0x50] sm:$0xff]  ;;  %v319_v12 = vld [vmem:[%s977_s5 + $0x58] sm:$0xff]  ;;  %v445_v14 = vld [vmem:[%s978_s4] ss:$0 sm:$0xff] }
  0x11   :  { %645 = vmatpush3.bf16.msra.mxu1 %v644_v17  ;;  %v698_v13 = vpack.c.bf16 %v319_v12, %v318_v11  ;;  %v320_v19 = vld [vmem:[%s977_s5 + $0x60] sm:$0xff]  ;;  %v322_v22 = vld [vmem:[%s977_s5 + $0x70] sm:$0xff] }
  0x12   :  { %646 = vmatprep.subr.bf16.mxu1 %v716_v0  ;;  %666 = vmatpush3.bf16.msra.mxu0 %v665_v38  ;;  %v463_v27 = vld [vmem:[%s978_s4 + $0x1] ss:$0 sm:$0xff]  ;;  %v464_v33 = vld [vmem:[%s979_s6] ss:$0 sm:$0xff]  ;;  %s719_s4 = smov 4  }
  0x13   :  { %667 = vmatprep.subr.bf16.mxu0 %v716_v0 }
  0x15   :  { %648 = vmatpush3.bf16.msra.mxu1 %v647_v20  ;;  %v321_v20 = vld [vmem:[%s977_s5 + $0x68] sm:$0xff] }
  0x16   :  { %649 = vmatprep.subr.bf16.mxu1 %v716_v0  ;;  %669 = vmatpush3.bf16.msra.mxu0 %v668_v41  ;;  %v701_v21 = vpack.c.bf16 %v321_v20, %v320_v19 }
  0x17   :  { %670 = vmatprep.subr.bf16.mxu0 %v716_v0 }
  0x19   :  { %651 = vmatpush3.bf16.msra.mxu1 %v650_v23  ;;  %v323_v23 = vld [vmem:[%s977_s5 + $0x78] sm:$0xff] }
  0x1a   :  { %652 = vmatprep.subr.bf16.mxu1 %v716_v0  ;;  %672 = vmatpush3.bf16.msra.mxu0 %v671_v44  ;;  %v704_v24 = vpack.c.bf16 %v323_v23, %v322_v22 }
  0x1b   :  { %673 = vmatprep.subr.bf16.mxu0 %v716_v0 }
  0x1d   :  { %654 = vmatpush3.bf16.msra.mxu1 %v653_v26  ;;  %v302_v26 = vand.u32 127, %v301_v25 }
  0x1e   :  { %655 = vmatprep.subr.bf16.mxu1 %v716_v0  ;;  %675 = vmatpush3.bf16.msra.mxu0 %v674_v47 }
  0x1f   :  { %676 = vmatprep.subr.bf16.mxu0 %v716_v0  ;;  %vm303_vm2 = vcmp.ge.s32.totalorder %v302_v26, 32  ;;  %vm304_vm3 = vcmp.lt.s32.totalorder %v302_v26, 64  ;;  %vm401_vm5 = vcmp.ge.s32.totalorder %v302_v26, 1  ;;  %vm402_vm6 = vcmp.lt.s32.totalorder %v302_v26, 5 }
  0x20   :  { %vm305_vm4 = vmand %vm303_vm2, %vm304_vm3  ;;  %vm426_vm8 = vcmp.eq.s32.totalorder %v302_v26, 4  ;;  %vm419_vm9 = vcmp.ge.s32.totalorder %v302_v26, 5  ;;  %vm420_vm10 = vcmp.lt.s32.totalorder %v302_v26, 8  ;;  %vm404_vm12 = vcmp.ge.s32.totalorder %v302_v26, 9 }
  0x21   :  { %657 = vmatpush3.bf16.msra.mxu1 %v656_v29  ;;  %vm962_vm7 = vmand %vm401_vm5, %vm402_vm6  ;;  %vm405_vm13 = vcmp.lt.s32.totalorder %v302_v26, 13  ;;  %vm436_vm15 = vcmp.eq.s32.totalorder %v302_v26, 8 }
  0x22   :  { %682 = vmatprep.subr.bf16.mxu1 %v716_v0  ;;  %678 = vmatpush3.bf16.msra.mxu0 %v677_v50  ;;  %vm421_vm11 = vmand %vm419_vm9, %vm420_vm10 }
  0x23   :  { %679 = vmatprep.subr.bf16.mxu0 %v716_v0  ;;  %vm406_vm14 = vmand %vm404_vm12, %vm405_vm13 }
  0x26   :  { %681 = vmatpush3.bf16.msra.mxu0 %v680_v58 }
  0xda   :  { %v106_v52 = vpop.f32.mrb[0].mxu0 }
  0xdb   :  { %v886_v53 = vadd.f32 %v443_v51, %v106_v52  ;;  %v525_v54 = vpop.f32.mrb[1].mxu0 }
  0xdd   :  { %v110_v55 = vmax.f32 %v886_v53, 0.0  ;;  %v306_v31 = vsel %vm305_vm4, %v886_v53, 0.0 }
  0xdf   :  { %559 = vmatmul.mubr.f32.vlgmr.msra.gmra.mrb[0].mxu1 %v110_v55 }
  0xe0   :  { %628 = vmatprep.mubr.msk.f32.mxu1 %vm717_vm0, %v718_v3  ;;  %684 = vmatpush3.bf16.msra.mxu1 %v683_v62  ;;  %v313_v3 = vld [vmem:[%s977_s5 + $0x28] sm:$0xff] }
  0xe1   :  { %685 = vmatprep.subr.bf16.mxu1 %v716_v0  ;;  %v689_v4 = vpack.c.bf16 %v313_v3, %v312_v2 }
  0xe4   :  { %687 = vmatpush3.bf16.msra.mxu1 %v686_v1 }
  0xe5   :  { %688 = vmatprep.subr.bf16.mxu1 %v716_v0 }
  0xe8   :  { %690 = vmatpush3.bf16.msra.mxu1 %v689_v4 }
  0xe9   :  { %691 = vmatprep.subr.bf16.mxu1 %v716_v0 }
  0xec   :  { %693 = vmatpush3.bf16.msra.mxu1 %v692_v7 }
  0xed   :  { %694 = vmatprep.subr.bf16.mxu1 %v716_v0 }
  0xf0   :  { %696 = vmatpush3.bf16.msra.mxu1 %v695_v10 }
  0xf1   :  { %697 = vmatprep.subr.bf16.mxu1 %v716_v0 }
  0xf4   :  { %699 = vmatpush3.bf16.msra.mxu1 %v698_v13 }
  0xf5   :  { %700 = vmatprep.subr.bf16.mxu1 %v716_v0 }
  0xf8   :  { %702 = vmatpush3.bf16.msra.mxu1 %v701_v21 }
  0xf9   :  { %703 = vmatprep.subr.bf16.mxu1 %v716_v0 }
  0xfc   :  { %705 = vmatpush3.bf16.msra.mxu1 %v704_v24 }
 0x1b2   :  { %v200_v15 = vpop.f32.mrb[0].mxu1 }
 0x1b3   :  { %v201_v16 = vadd.f32 %v445_v14, %v200_v15  ;;  %v560_v17 = vpop.f32.mrb[1].mxu1 }
 0x1b5   :  { %v204_v18 = vmax.f32 %v201_v16, 0.0 }
 0x1b7   :  { %594 = vmatmul.mubr.f32.vlgmr.msra.gmra.mrb[2].mxu0 %v204_v18 }
 0x28a   :  { %v296_v28 = vpop.f32.mrb[2].mxu0 }
 0x28b   :  { %v297_v0 = vadd.f32 %v463_v27, %v296_v28  ;;  %v595_v29 = vpop.f32.mrb[3].mxu0 }
 0x28d   :  { %v300_v30 = vmax.f32 %v297_v0, 0.0 }
 0x28f   :  { %v307_v32 = vadd.f32 %v306_v31, %v300_v30 }
 0x291   :  { %629 = vmatmul.mubr.f32.vlgmr.msra.gmra.mrb[2].mxu1 %v307_v32 }
 0x364   :  { %v397_v34 = vpop.f32.mrb[2].mxu1 }
 0x365   :  { %v398_v36 = vadd.f32 %v464_v33, %v397_v34  ;;  %v630_v37 = vpop.f32.mrb[3].mxu1 }
 0x367   :  { %v407_v38 = vsel %vm962_vm7, %v398_v36, -inf  ;;  %v434_v55 = vand.u32 2147483647, %v398_v36 }
 0x368   :  { %408 = vmax.xlane.f32.xlu0 %v407_v38 }
 0x3f5   :  { %v409_v39 = vpop.xlane.xlu0 %408 }
 0x3f6   :  { %v410_v40 = vsub.f32 %v407_v38, %v409_v39 }
 0x3f8   :  { %v411_v41 = vmul.f32 1.442695, %v410_v40 }
 0x3fa   :  { %710 = vpow2.f32 %v411_v41 }
 0x404   :  { %v711_v42 = vpop.eup %710 }
 0x405   :  { %413 = vadd.xlane.f32.xlu0 %v711_v42 }
 0x492   :  { %v414_v43 = vpop.xlane.xlu0 %413 }
 0x493   :  { %712 = vrcp.f32 %v414_v43 }
 0x49d   :  { %v713_v44 = vpop.eup %712 }
 0x49e   :  { %v416_v45 = vmul.f32 %v713_v44, %v711_v42 }
 0x4a0   :  { %417 = vrot.lane.b32.xlu1 %v416_v45, %s719_s4  ;;  %v427_v46 = vsel %vm426_vm8, %v416_v45, 0.0  ;;  %v433_v52 = vsel %vm962_vm7, %v416_v45, %v398_v36 }
 0x4a1   :  { %v435_v57 = vsel %vm406_vm14, %v434_v55, %v433_v52 }
 0x4c4   :  { %428 = vadd.xlane.f32.xlu1 %v427_v46 }
 0x512   :  { %v418_v47 = vpop.permute.xlu1 %417 }
 0x513   :  { %v422_v48 = vmul.f32 %v418_v47, %v398_v36 }
 0x515   :  { %v423_v49 = vsel %vm421_vm11, %v422_v48, 0.0 }
 0x516   :  { %424 = vadd.xlane.f32.xlu0 %v423_v49 }
 0x551   :  { %v429_v50 = vpop.xlane.xlu1 %428 }
 0x552   :  { %714 = vrcp.f32 %v429_v50 }
 0x55c   :  { %v715_v54 = vpop.eup %714 }
 0x5a3   :  { %v425_v51 = vpop.xlane.xlu0 %424 }
 0x5a4   :  { %v430_v53 = vsub.f32 0.0, %v425_v51 }
 0x5a6   :  { %v432_v56 = vmul.f32 %v715_v54, %v430_v53 }
 0x5a8   :  { %v437_v58 = vsel %vm436_vm15, %v432_v56, %v435_v57 }
 0x5a9   :  { %438 = vst [vmem:[%s980_s7] sm:$0xff] %v437_v58 }

</bundles_post_ra>
